<compile_context>
chip_gen: v7x
topology: tpu7x:2x2x1
jax: 0.10.0
libtpu: 0.0.40
codegen_flags: <defaults>
</compile_context>

<pallas_src>
import jax
import jax.numpy as jnp
from jax import lax
from jax.experimental import pallas as pl
from jax.experimental.pallas import tpu as pltpu


def _ret_kernel(mean_ref, cov_ref, pmean_ref, pcov_ref, ret_ref):
    """Per-row Wasserstein distance for one (TILE_N, D) tile."""
    m1 = jax.nn.sigmoid(mean_ref[...].astype(jnp.float32))
    m2 = jax.nn.sigmoid(pmean_ref[...].astype(jnp.float32))
    dm = m1 - m2
    ret = jnp.sum(dm * dm, axis=-1, keepdims=True)                 # (TILE_N, 1)

    # sqrt(sigmoid(x)) == rsqrt(1 + exp(-x)): exp + rsqrt instead of
    # exp + recip + clip + sqrt on the EUP-bound path.
    c1s = lax.rsqrt(1.0 + jnp.exp(-cov_ref[...].astype(jnp.float32)))
    c2s = lax.rsqrt(1.0 + jnp.exp(-pcov_ref[...].astype(jnp.float32)))
    dc = c1s - c2s
    ret_ref[...] = ret + jnp.sum(dc * dc, axis=-1, keepdims=True)


def _make_finalize_kernel(lambda_pretraining):
    lam = float(lambda_pretraining)

    def kernel(ret_ref, out_ref):
        ret = ret_ref[...]                              # (N, 1), all >= 0
        pos = ret * (1.0 / jnp.max(ret))                # one reciprocal + VPU muls
        # -log(sigmoid(-pos + 1e-24)) == log(1 + exp(pos - 1e-24))  (softplus)
        loss = jnp.log(1.0 + jnp.exp(pos - 1e-24))      # all >= log(2) > 0
        # sum(loss / max(loss)) * lam == sum(loss) / max(loss) * lam
        out_ref[0, 0] = jnp.sum(loss) * (1.0 / jnp.max(loss)) * lam

    return kernel


def _choose_tile_n(n, d, itemsize, budget_bytes=24 * 1024 * 1024):
    """Largest row tile s.t. 4 inputs x 2 pipeline buffers fit in budget_bytes."""
    per_row = 4 * 2 * d * itemsize
    tile = max(8, budget_bytes // per_row)
    if tile >= n:
        return n                                  # single block == full array
    return int(max(8, (tile // 8) * 8))           # sublane-aligned


def wasserstein_loss(mean_out, cov_out, pos_mean_emb, pos_cov_emb,
                     lambda_pretraining: float = 1e-05, tile_n=None):
    """Pallas implementation of WassersteinLoss.forward. Returns a scalar."""
    assert mean_out.shape == cov_out.shape == pos_mean_emb.shape == pos_cov_emb.shape
    d = mean_out.shape[-1]
    # Reduction is over the last axis only; flatten any leading dims.
    mean_out = mean_out.reshape(-1, d)
    cov_out = cov_out.reshape(-1, d)
    pos_mean_emb = pos_mean_emb.reshape(-1, d)
    pos_cov_emb = pos_cov_emb.reshape(-1, d)
    n = mean_out.shape[0]

    itemsize = jnp.dtype(mean_out.dtype).itemsize
    if tile_n is None:
        tile_n = _choose_tile_n(n, d, itemsize)
    tile_n = int(min(tile_n, n))
    if tile_n < n:
        tile_n = max(8, (tile_n // 8) * 8)        # keep (8, 128) divisibility
    num_tiles = pl.cdiv(n, tile_n)

    # Double-buffered inputs + small double-buffered (TILE_N, 1) output + slack.
    vmem_bytes = 4 * 2 * tile_n * d * itemsize + 2 * tile_n * 4
    vmem_limit = int(min(max(vmem_bytes + (4 << 20), 16 << 20), 48 << 20))

    # TODO(synk): lane-pack rows when D < 128 so all 128 lanes per vreg are used.
    row_spec = pl.BlockSpec((tile_n, d), lambda i: (i, 0))

    # Pass 1: per-row Wasserstein distances, streamed over N.
    ret = pl.pallas_call(
        _ret_kernel,
        out_shape=jax.ShapeDtypeStruct((n, 1), jnp.float32),
        grid_spec=pltpu.PrefetchScalarGridSpec(
            num_scalar_prefetch=0,
            grid=(num_tiles,),
            in_specs=[row_spec, row_spec, row_spec, row_spec],
            out_specs=pl.BlockSpec((tile_n, 1), lambda i: (i, 0)),
        ),
        compiler_params=pltpu.CompilerParams(
            dimension_semantics=("parallel",),
            vmem_limit_bytes=vmem_limit,
        ),
    )(mean_out, cov_out, pos_mean_emb, pos_cov_emb)

    # Pass 2: tiny finalize (global normalize + softplus + normalize + sum).
    out = pl.pallas_call(
        _make_finalize_kernel(lambda_pretraining),
        out_shape=jax.ShapeDtypeStruct((1, 1), jnp.float32),
        in_specs=[pl.BlockSpec(memory_space=pltpu.VMEM)],
        out_specs=pl.BlockSpec(memory_space=pltpu.VMEM),
    )(ret)
    return out[0, 0]


def _reference(mean_out, cov_out, pos_mean_emb, pos_cov_emb, lam=1e-05):
    # Plain-JAX, faithful translation of the PyTorch forward (sanity check).
    m1 = jax.nn.sigmoid(mean_out.astype(jnp.float32))
    c1 = jax.nn.sigmoid(cov_out.astype(jnp.float32))
    m2 = jax.nn.sigmoid(pos_mean_emb.astype(jnp.float32))
    c2 = jax.nn.sigmoid(pos_cov_emb.astype(jnp.float32))
    ret = jnp.sum((m1 - m2) ** 2, -1)
    c1s = jnp.sqrt(jnp.clip(c1, 1e-24))
    c2s = jnp.sqrt(jnp.clip(c2, 1e-24))
    ret = ret + jnp.sum((c1s - c2s) ** 2, -1)
    pos = ret / jnp.max(jnp.abs(ret))
    loss = -jnp.log(jax.nn.sigmoid(-pos + 1e-24))
    loss = loss / jnp.max(jnp.abs(loss))
    return jnp.sum(loss) * lam


if __name__ == "__main__":
    key = jax.random.PRNGKey(0)
    keys = jax.random.split(key, 8)

    # Shapes implied by the forward: (seq, hidden) distribution embeddings.
    N, D = 8, 32
    args = tuple(jax.random.normal(keys[i], (N, D), dtype=jnp.float32)
                 for i in range(4))
    loss = wasserstein_loss(*args)
    jax.block_until_ready(loss)
    ref = _reference(*args)
    assert jnp.allclose(loss, ref, rtol=1e-4, atol=1e-10), (loss, ref)

    # Exercise the tiled / pipelined path (grid > 1, ragged last tile).
    N2, D2 = 40, 32
    args2 = tuple(jax.random.normal(keys[4 + i], (N2, D2), dtype=jnp.float32)
                  for i in range(4))
    loss2 = wasserstein_loss(*args2, tile_n=16)
    jax.block_until_ready(loss2)
    ref2 = _reference(*args2)
    assert jnp.allclose(loss2, ref2, rtol=1e-4, atol=1e-10), (loss2, ref2)

    print("KERNEL_OK")
</pallas_src>

<mosaic_0001>
module attributes {stable_mosaic.version = 11 : i64} {
  func.func @_ret_kernel(%arg0: i32, %arg1: memref<8x32xf32, #tpu.memory_space<vmem>>, %arg2: memref<8x32xf32, #tpu.memory_space<vmem>>, %arg3: memref<8x32xf32, #tpu.memory_space<vmem>>, %arg4: memref<8x32xf32, #tpu.memory_space<vmem>>, %arg5: memref<8x1xf32, #tpu.memory_space<vmem>>) attributes {dimension_semantics = [#tpu.dimension_semantics<parallel>], iteration_bounds = array<i64: 1>, scalar_prefetch = 0 : i64, scratch_operands = 0 : i64, tpu.core_type = #tpu.core_type<tc>, window_params = [{transform_indices = @transform_0, window_bounds = array<i64: 8, 32>}, {transform_indices = @transform_1, window_bounds = array<i64: 8, 32>}, {transform_indices = @transform_2, window_bounds = array<i64: 8, 32>}, {transform_indices = @transform_3, window_bounds = array<i64: 8, 32>}, {transform_indices = @transform_4, window_bounds = array<i64: 8, 1>}]} {
    %c0 = arith.constant 0 : index
    %c0_0 = arith.constant 0 : index
    %0 = vector.load %arg1[%c0, %c0_0] : memref<8x32xf32, #tpu.memory_space<vmem>>, vector<8x32xf32>
    %1 = arith.negf %0 : vector<8x32xf32>
    %2 = math.exp %1 : vector<8x32xf32>
    %cst = arith.constant 1.000000e+00 : f32
    %3 = vector.broadcast %cst : f32 to vector<8x32xf32>
    %4 = arith.addf %3, %2 : vector<8x32xf32>
    %5 = arith.divf %3, %4 : vector<8x32xf32>
    %c0_1 = arith.constant 0 : index
    %c0_2 = arith.constant 0 : index
    %6 = vector.load %arg3[%c0_1, %c0_2] : memref<8x32xf32, #tpu.memory_space<vmem>>, vector<8x32xf32>
    %7 = arith.negf %6 : vector<8x32xf32>
    %8 = math.exp %7 : vector<8x32xf32>
    %cst_3 = arith.constant 1.000000e+00 : f32
    %9 = vector.broadcast %cst_3 : f32 to vector<8x32xf32>
    %10 = arith.addf %9, %8 : vector<8x32xf32>
    %11 = arith.divf %9, %10 : vector<8x32xf32>
    %12 = arith.subf %5, %11 : vector<8x32xf32>
    %13 = arith.mulf %12, %12 : vector<8x32xf32>
    %cst_4 = arith.constant dense<0.000000e+00> : vector<8xf32>
    %14 = vector.multi_reduction <add>, %13, %cst_4 [1] : vector<8x32xf32> to vector<8xf32>
    %15 = vector.shape_cast %14 : vector<8xf32> to vector<8x1xf32>
    %c0_5 = arith.constant 0 : index
    %c0_6 = arith.constant 0 : index
    %16 = vector.load %arg2[%c0_5, %c0_6] : memref<8x32xf32, #tpu.memory_space<vmem>>, vector<8x32xf32>
    %cst_7 = arith.constant 0.000000e+00 : f32
    %17 = vector.broadcast %cst_7 : f32 to vector<8x32xf32>
    %18 = arith.subf %17, %16 : vector<8x32xf32>
    %19 = math.exp %18 : vector<8x32xf32>
    %cst_8 = arith.constant 1.000000e+00 : f32
    %20 = vector.broadcast %cst_8 : f32 to vector<8x32xf32>
    %21 = arith.addf %20, %19 : vector<8x32xf32>
    %22 = math.rsqrt %21 : vector<8x32xf32>
    %c0_9 = arith.constant 0 : index
    %c0_10 = arith.constant 0 : index
    %23 = vector.load %arg4[%c0_9, %c0_10] : memref<8x32xf32, #tpu.memory_space<vmem>>, vector<8x32xf32>
    %cst_11 = arith.constant 0.000000e+00 : f32
    %24 = vector.broadcast %cst_11 : f32 to vector<8x32xf32>
    %25 = arith.subf %24, %23 : vector<8x32xf32>
    %26 = math.exp %25 : vector<8x32xf32>
    %cst_12 = arith.constant 1.000000e+00 : f32
    %27 = vector.broadcast %cst_12 : f32 to vector<8x32xf32>
    %28 = arith.addf %27, %26 : vector<8x32xf32>
    %29 = math.rsqrt %28 : vector<8x32xf32>
    %30 = arith.subf %22, %29 : vector<8x32xf32>
    %31 = arith.mulf %30, %30 : vector<8x32xf32>
    %cst_13 = arith.constant dense<0.000000e+00> : vector<8xf32>
    %32 = vector.multi_reduction <add>, %31, %cst_13 [1] : vector<8x32xf32> to vector<8xf32>
    %33 = vector.shape_cast %32 : vector<8xf32> to vector<8x1xf32>
    %34 = arith.addf %15, %33 : vector<8x1xf32>
    %c0_14 = arith.constant 0 : index
    %c0_15 = arith.constant 0 : index
    %35 = vector.load %arg5[%c0_14, %c0_15] : memref<8x1xf32, #tpu.memory_space<vmem>>, vector<8x1xf32>
    tpu.vector_store %arg5[%c0_14, %c0_15], %34 {strides = array<i32>} : memref<8x1xf32, #tpu.memory_space<vmem>>, vector<8x1xf32>,
    return
  }
  func.func @transform_0(%arg0: i32) -> (i32, i32) {
    %c0_i32 = arith.constant 0 : i32
    %c0_i32_0 = arith.constant 0 : i32
    return %arg0, %c0_i32 : i32, i32
  }
  func.func @transform_1(%arg0: i32) -> (i32, i32) {
    %c0_i32 = arith.constant 0 : i32
    %c0_i32_0 = arith.constant 0 : i32
    return %arg0, %c0_i32 : i32, i32
  }
  func.func @transform_2(%arg0: i32) -> (i32, i32) {
    %c0_i32 = arith.constant 0 : i32
    %c0_i32_0 = arith.constant 0 : i32
    return %arg0, %c0_i32 : i32, i32
  }
  func.func @transform_3(%arg0: i32) -> (i32, i32) {
    %c0_i32 = arith.constant 0 : i32
    %c0_i32_0 = arith.constant 0 : i32
    return %arg0, %c0_i32 : i32, i32
  }
  func.func @transform_4(%arg0: i32) -> (i32, i32) {
    %c0_i32 = arith.constant 0 : i32
    %c0_i32_0 = arith.constant 0 : i32
    return %arg0, %c0_i32 : i32, i32
  }
}

</mosaic_0001>

<bundles_post_ra>
// kernel: tpu_custom_call.1
= control target key start
LH: loop header
LB: loop body
LE: loop exit
PB: predicated region body
PF: predicated region fallthrough
CT: control target
= control target key end

     0   :  { %9 = vsyncpa [#allocation3], 0  ;;  %s259_s0 = inlined_call_operand.hbm [shape: f32[8,32], index: 0, kind: input, shape index: {}]   ;;  %s260_s1 = inlined_call_operand.hbm [shape: f32[8,32], index: 1, kind: input, shape index: {}]   ;;  %s261_s2 = inlined_call_operand.hbm [shape: f32[8,32], index: 2, kind: input, shape index: {}]   ;;  %s262_s3 = inlined_call_operand.vmem [shape: f32[8,32], index: 3, kind: input, shape index: {}]   ;;  %s263_s4 = inlined_call_operand.vmem [shape: f32[8,1], index: 4, kind: output, shape index: {}]  }
   0x1   :  { %10 = vsyncpa [#allocation5], 0  ;;  %s189_s15 = smov [#allocation4]   ;;  %s190_s17 = smov [#allocation2]  }
   0x2   :  { %s27_s16 = sshll.u32 %s189_s15, 4  ;;  %s17_s18 = sshll.u32 %s190_s17, 4  ;;  %s28_s16 = int_to_ptr.vmem [resolvable:$true] %s27_s16  ;;  %s18_s18 = int_to_ptr.vmem [resolvable:$true] %s17_s18 }
   0x3   :  { %s119_s21 = scalar_lea.hbm %s260_s1, 128 }
   0x4   :  { %p120_p0 = scmp.ne.s32.totalorder %s260_s1, %s119_s21  ;;  %p123_p1 = scmp.lt.u32.totalorder %s119_s21, %s260_s1 }
   0x6   :  { %p125_p2 = pnand %p123_p1, %p120_p0 }
   0x8   :  { %128 = shalt.err (!%p125_p2)
}
   0x9   :  { %s129_s26 = scalar_lea.vmem %s28_s16, 128  ;;  %p134_p4 = scmp.lt.s32.totalorder %s28_s16, %s28_s16 }
   0xa   :  { %p130_p3 = scmp.ne.s32.totalorder %s28_s16, %s129_s26  ;;  %p135_p5 = scmp.lt.s32.totalorder %s129_s26, %s129_s26 }
   0xc   :  { %p136_p6 = por %p135_p5, %p134_p4 }
   0xe   :  { %p137_p7 = pnand %p136_p6, %p130_p3 }
  0x10   :  { %140 = shalt.err (!%p137_p7)
}
  0x11   :  { %30 = dma.hbm_to_vmem [thread:$0]  %s260_s1, 128, %s28_s16, [#allocation5]  }
  0x12   :  { %s141_s5 = scalar_lea.hbm %s259_s0, 128 }
  0x13   :  { %p142_p8 = scmp.ne.s32.totalorder %s259_s0, %s141_s5  ;;  %p145_p9 = scmp.lt.u32.totalorder %s141_s5, %s259_s0 }
  0x15   :  { %p147_p10 = pnand %p145_p9, %p142_p8 }
  0x17   :  { %150 = shalt.err (!%p147_p10)
}
  0x18   :  { %s151_s10 = scalar_lea.vmem %s18_s18, 128  ;;  %p156_p12 = scmp.lt.s32.totalorder %s18_s18, %s18_s18 }
  0x19   :  { %p152_p11 = scmp.ne.s32.totalorder %s18_s18, %s151_s10  ;;  %p157_p13 = scmp.lt.s32.totalorder %s151_s10, %s151_s10 }
  0x1b   :  { %p158_p0 = por %p157_p13, %p156_p12 }
  0x1d   :  { %p159_p1 = pnand %p158_p0, %p152_p11 }
  0x1f   :  { %162 = shalt.err (!%p159_p1)
}
  0x20   :  { %20 = dma.hbm_to_vmem [thread:$0]  %s259_s0, 128, %s18_s18, [#allocation3]  }
  0x21   :  { %s191_s12 = smov [#allocation6]   ;;  %s163_s16 = scalar_lea.hbm %s261_s2, 128 }
  0x22   :  { %s37_s13 = sshll.u32 %s191_s12, 4  ;;  %p164_p2 = scmp.ne.s32.totalorder %s261_s2, %s163_s16  ;;  %s38_s13 = int_to_ptr.vmem [resolvable:$true] %s37_s13 }
  0x23   :  { %p167_p3 = scmp.lt.u32.totalorder %s163_s16, %s261_s2 }
  0x25   :  { %p169_p4 = pnand %p167_p3, %p164_p2 }
  0x27   :  { %172 = shalt.err (!%p169_p4)
}
  0x28   :  { %s173_s22 = scalar_lea.vmem %s38_s13, 128  ;;  %p178_p6 = scmp.lt.s32.totalorder %s38_s13, %s38_s13 }
  0x29   :  { %p174_p5 = scmp.ne.s32.totalorder %s38_s13, %s173_s22  ;;  %p179_p7 = scmp.lt.s32.totalorder %s173_s22, %s173_s22 }
  0x2b   :  { %p180_p8 = por %p179_p7, %p178_p6 }
  0x2d   :  { %p181_p9 = pnand %p180_p8, %p174_p5 }
  0x2f   :  { %184 = shalt.err (!%p181_p9)
}
  0x30   :  { %40 = dma.hbm_to_vmem [thread:$0]  %s261_s2, 128, %s38_s13, [#allocation5]  }
  0x31   :  { %185 = dma.done.wait [#allocation3], 128  }
  0x32   :  { %186 = vsyncadd [#allocation3], 4294967168 }
  0x33   :  { %187 = dma.done.wait [#allocation5], 256  }
  0x34   :  { %188 = vsyncadd [#allocation5], 4294967040  ;;  %v52_v0 = vld [vmem:[#allocation2] sm:$0xff]  ;;  %v59_v1 = vld [vmem:[#allocation6] sm:$0xff]  ;;  %vm68_vm0 = vcmask 261120   ;;  %vm90_vm1 = vcmask 7168  }
  0x35   :  { %v72_v2 = vld [vmem:[#allocation4] sm:$0xff]  ;;  %v98_v3 = vmul.f32 -1.442695, %v52_v0  ;;  %v99_v4 = vmul.f32 -1.442695, %v59_v1  ;;  %v78_v6 = vld [vmem:[%s262_s3] sm:$0xff] }
  0x36   :  { %v73_v5 = vsub.f32 0.0, %v72_v2  ;;  %v79_v7 = vsub.f32 0.0, %v78_v6 }
  0x37   :  { %103 = vpow2.f32 %v98_v3 }
  0x38   :  { %v74_v8 = vmul.f32 1.442695, %v73_v5  ;;  %105 = vpow2.f32 %v99_v4  ;;  %v80_v9 = vmul.f32 1.442695, %v79_v7 }
  0x3a   :  { %107 = vpow2.f32 %v74_v8 }
  0x3b   :  { %109 = vpow2.f32 %v80_v9 }
  0x41   :  { %v104_v10 = vpop.eup %103 }
  0x42   :  { %v106_v11 = vpop.eup %105  ;;  %v56_v12 = vadd.f32 1.0, %v104_v10 }
  0x43   :  { %v63_v14 = vadd.f32 1.0, %v106_v11 }
  0x44   :  { %v108_v13 = vpop.eup %107  ;;  %111 = vrcp.f32 %v56_v12 }
  0x45   :  { %v110_v15 = vpop.eup %109  ;;  %v76_v16 = vadd.f32 1.0, %v108_v13  ;;  %113 = vrcp.f32 %v63_v14 }
  0x46   :  { %v82_v17 = vadd.f32 1.0, %v110_v15 }
  0x47   :  { %115 = vrsqrt.f32 %v76_v16 }
  0x48   :  { %117 = vrsqrt.f32 %v82_v17 }
  0x4e   :  { %v112_v18 = vpop.eup %111 }
  0x4f   :  { %v114_v19 = vpop.eup %113 }
  0x50   :  { %v66_v21 = vsub.f32 %v112_v18, %v114_v19 }
  0x51   :  { %v116_v20 = vpop.eup %115 }
  0x52   :  { %v118_v22 = vpop.eup %117  ;;  %v67_v23 = vmul.f32 %v66_v21, %v66_v21 }
  0x53   :  { %v84_v24 = vsub.f32 %v116_v20, %v118_v22 }
  0x54   :  { %v69_v25 = vsel %vm68_vm0, %v67_v23, 0.0 }
  0x55   :  { %v85_v26 = vmul.f32 %v84_v24, %v84_v24  ;;  %70 = vadd.xlane.f32.xlu0 %v69_v25 }
  0x57   :  { %v86_v27 = vsel %vm68_vm0, %v85_v26, 0.0 }
  0x59   :  { %87 = vadd.xlane.f32.xlu0 %v86_v27 }
  0xe2   :  { %v71_v28 = vpop.xlane.xlu0 %70 }
  0xe6   :  { %v88_v29 = vpop.xlane.xlu0 %87 }
  0xe7   :  { %v89_v30 = vadd.f32 %v88_v29, %v71_v28 }
  0xe9   :  { %91 = vst.msk [vmem:[%s263_s4] sm:$0xff] %vm90_vm1, %v89_v30 }
  0xea   :  { %96 = vsyncpa [#allocation3], 1 }
  0xeb   :  { %97 = vsyncpa [#allocation5], 1 }

</bundles_post_ra>
